<compile_context>
chip_gen: v5e
topology: v5e:2x2
jax: 0.10.0
libtpu: 0.0.40
codegen_flags: <defaults>
</compile_context>

<pallas_src>
import math

import jax
import jax.numpy as jnp
from jax.experimental import pallas as pl
from jax.experimental.pallas import tpu as pltpu

_LANES = 1024                   # lane-dense last dim (multiple of 128)
_TARGET_BLOCK_BYTES = 2 << 20   # ~2 MiB per block


def _mish_kernel(x_ref, o_ref):
    xf = x_ref[...].astype(jnp.float32)
    # tanh(softplus(x)) = t / (t + 2) with t = e^x * (e^x + 2).
    # Clamp the exp argument at 20 so the unselected branch never overflows;
    # for x > 20 PyTorch's softplus(x) == x and tanh(x) == 1 in f32, so
    # mish(x) == x there.
    e = jnp.exp(jnp.minimum(xf, 20.0))
    t = e * (e + 2.0)
    # NOTE: pl.reciprocal(t + 2, approx=True) could replace the divide, but the
    # kernel is HBM-bound so it is perf-neutral; keep the exact divide for
    # tight agreement with the PyTorch reference.
    y = jnp.where(xf > 20.0, xf, xf * (t / (t + 2.0)))
    o_ref[...] = y.astype(o_ref.dtype)


def mish(x):
    """Mish forward for an arbitrary-shape (e.g. NCHW) tensor."""
    orig_shape = x.shape
    total = math.prod(orig_shape)
    itemsize = jnp.dtype(x.dtype).itemsize

    rows_raw = -(-total // _LANES)  # ceil(total / _LANES)

    # Rows per block from a byte budget, rounded down to a multiple of 8.
    block_rows = max(8, (_TARGET_BLOCK_BYTES // (_LANES * itemsize)) // 8 * 8)
    # Keep at least 2 grid steps when there's enough data so the "parallel"
    # axis can be split across v7x's two TensorCores.
    if rows_raw >= 16:
        block_rows = min(block_rows, max(8, (rows_raw // 2) // 8 * 8))
    else:
        block_rows = 8

    rows = -(-rows_raw // block_rows) * block_rows   # pad rows -> full blocks
    padded_total = rows * _LANES

    x_flat = x.reshape(-1)
    if padded_total != total:
        x_flat = jnp.pad(x_flat, (0, padded_total - total))
    x2 = x_flat.reshape(rows, _LANES)

    grid = (rows // block_rows,)

    out = pl.pallas_call(
        _mish_kernel,
        out_shape=jax.ShapeDtypeStruct((rows, _LANES), x.dtype),
        grid_spec=pltpu.PrefetchScalarGridSpec(
            num_scalar_prefetch=0,
            grid=grid,
            in_specs=[pl.BlockSpec((block_rows, _LANES), lambda i: (i, 0))],
            out_specs=pl.BlockSpec((block_rows, _LANES), lambda i: (i, 0)),
        ),
        compiler_params=pltpu.CompilerParams(
            dimension_semantics=("parallel",),
        ),
    )(x2)

    out_flat = out.reshape(-1)
    if padded_total != total:
        out_flat = out_flat[:total]
    return out_flat.reshape(orig_shape)


def mish_ref(x):
    """Pure-JAX reference matching PyTorch's x * tanh(softplus(x))."""
    xf = x.astype(jnp.float32)
    sp = jnp.where(xf > 20.0, xf, jnp.log1p(jnp.exp(jnp.minimum(xf, 20.0))))
    return (xf * jnp.tanh(sp)).astype(x.dtype)


if __name__ == "__main__":
    key = jax.random.PRNGKey(0)
    x = jax.random.normal(key, (2, 4, 16, 16), dtype=jnp.float32) * 3.0

    y = mish(x)
    jax.block_until_ready(y)

    y_ref = mish_ref(x)
    assert y.shape == x.shape and y.dtype == x.dtype
    max_err = float(jnp.max(jnp.abs(y.astype(jnp.float32) - y_ref.astype(jnp.float32))))
    assert max_err < 1e-4, f"max abs error {max_err}"
    print("KERNEL_OK")
</pallas_src>

<mosaic_0001>
module attributes {stable_mosaic.version = 11 : i64} {
  func.func @_mish_kernel(%arg0: i32, %arg1: memref<8x1024xf32, #tpu.memory_space<vmem>>, %arg2: memref<8x1024xf32, #tpu.memory_space<vmem>>) attributes {dimension_semantics = [#tpu.dimension_semantics<parallel>], iteration_bounds = array<i64: 1>, scalar_prefetch = 0 : i64, scratch_operands = 0 : i64, tpu.core_type = #tpu.core_type<tc>, window_params = [{transform_indices = @transform_0, window_bounds = array<i64: 8, 1024>}, {transform_indices = @transform_1, window_bounds = array<i64: 8, 1024>}]} {
    %c0 = arith.constant 0 : index
    %c0_0 = arith.constant 0 : index
    %0 = vector.load %arg1[%c0, %c0_0] : memref<8x1024xf32, #tpu.memory_space<vmem>>, vector<8x1024xf32>
    %cst = arith.constant 2.000000e+01 : f32
    %1 = vector.broadcast %cst : f32 to vector<8x1024xf32>
    %2 = arith.minimumf %0, %1 : vector<8x1024xf32>
    %3 = math.exp %2 : vector<8x1024xf32>
    %cst_1 = arith.constant 2.000000e+00 : f32
    %4 = vector.broadcast %cst_1 : f32 to vector<8x1024xf32>
    %5 = arith.addf %3, %4 : vector<8x1024xf32>
    %6 = arith.mulf %3, %5 : vector<8x1024xf32>
    %cst_2 = arith.constant 2.000000e+01 : f32
    %7 = vector.broadcast %cst_2 : f32 to vector<8x1024xf32>
    %8 = arith.cmpf ogt, %0, %7 : vector<8x1024xf32>
    %cst_3 = arith.constant 2.000000e+00 : f32
    %9 = vector.broadcast %cst_3 : f32 to vector<8x1024xf32>
    %10 = arith.addf %6, %9 : vector<8x1024xf32>
    %11 = arith.divf %6, %10 : vector<8x1024xf32>
    %12 = arith.mulf %0, %11 : vector<8x1024xf32>
    %13 = arith.select %8, %0, %12 : vector<8x1024xi1>, vector<8x1024xf32>
    %c0_4 = arith.constant 0 : index
    %c0_5 = arith.constant 0 : index
    %14 = vector.load %arg2[%c0_4, %c0_5] : memref<8x1024xf32, #tpu.memory_space<vmem>>, vector<8x1024xf32>
    tpu.vector_store %arg2[%c0_4, %c0_5], %13 {strides = array<i32>} : memref<8x1024xf32, #tpu.memory_space<vmem>>, vector<8x1024xf32>,
    return
  }
  func.func @transform_0(%arg0: i32) -> (i32, i32) {
    %c0_i32 = arith.constant 0 : i32
    %c0_i32_0 = arith.constant 0 : i32
    return %arg0, %c0_i32 : i32, i32
  }
  func.func @transform_1(%arg0: i32) -> (i32, i32) {
    %c0_i32 = arith.constant 0 : i32
    %c0_i32_0 = arith.constant 0 : i32
    return %arg0, %c0_i32 : i32, i32
  }
}

</mosaic_0001>

<bundles_post_ra>
// kernel: tpu_custom_call.1
= control target key start
LH: loop header
LB: loop body
LE: loop exit
PB: predicated region body
PF: predicated region fallthrough
CT: control target
= control target key end

     0   :  { %6 = vsyncpa [#allocation3], 0  ;;  %s579_s0 = inlined_call_operand.hbm [shape: f32[8,1024], index: 0, kind: input, shape index: {}]   ;;  %s580_s1 = inlined_call_operand.hbm [shape: f32[8,1024], index: 1, kind: output, shape index: {}]  }
   0x1   :  { %7 = vsyncpa [#allocation4], 0  ;;  %s13_s8 = sshll.u32 %s579_s0, 4  ;;  %s334_s9 = smov [#allocation2]   ;;  %s14_s8 = int_to_ptr.hbm [resolvable:$true] %s13_s8 }
   0x2   :  { %s15_s10 = sshll.u32 %s334_s9, 4  ;;  %s16_s10 = int_to_ptr.vmem [resolvable:$true] %s15_s10 }
   0x3   :  { %18 = dma.hbm_to_vmem [thread:$0]  %s14_s8, 1024, %s16_s10, [#allocation3]  }
   0x4   :  { %330 = dma.done.wait [#allocation3], 1024  }
   0x5   :  { %331 = vsyncadd [#allocation3], 4294966272  ;;  %v349_v0 = vld [vmem:[#allocation2] sm:$0xff]  ;;  %v351_v1 = vld [vmem:[#allocation2 + $0x8] sm:$0xff]  ;;  %s335_s0 = smov [#allocation5]   ;;  %s238_s14 = sshll.u32 %s580_s1, 4  ;;  %s239_s14 = int_to_ptr.hbm [resolvable:$true] %s238_s14 }
   0x6   :  { %v353_v2 = vld [vmem:[#allocation2 + $0x10] sm:$0xff]  ;;  %v31_v3 = vmin.f32 %v349_v0, 20.0  ;;  %v32_v4 = vmin.f32 %v351_v1, 20.0  ;;  %v358_v6 = vld [vmem:[#allocation2 + $0x18] sm:$0xff]  ;;  %v360_v7 = vld [vmem:[#allocation2 + $0x20] sm:$0xff]  ;;  %s236_s11 = sshll.u32 %s335_s0, 4  ;;  %s237_s11 = int_to_ptr.vmem [resolvable:$true] %s236_s11 }
   0x7   :  { %v33_v5 = vmin.f32 %v353_v2, 20.0  ;;  %v34_v8 = vmin.f32 %v358_v6, 20.0  ;;  %v35_v9 = vmin.f32 %v360_v7, 20.0  ;;  %v364_v10 = vld [vmem:[#allocation2 + $0x28] sm:$0xff]  ;;  %v367_v17 = vld [vmem:[#allocation2 + $0x30] sm:$0xff]  ;;  %v370_v20 = vld [vmem:[#allocation2 + $0x38] sm:$0xff] }
   0x8   :  { %v39_v11 = vmul.f32 1.442695, %v31_v3  ;;  %v41_v12 = vmul.f32 1.442695, %v32_v4  ;;  %v36_v15 = vmin.f32 %v364_v10, 20.0  ;;  %v37_v19 = vmin.f32 %v367_v17, 20.0 }
   0x9   :  { %v43_v13 = vmul.f32 1.442695, %v33_v5  ;;  %v45_v14 = vmul.f32 1.442695, %v34_v8  ;;  %v47_v16 = vmul.f32 1.442695, %v35_v9 }
   0xa   :  { %250 = vpow2.f32 %v39_v11  ;;  %v49_v18 = vmul.f32 1.442695, %v36_v15  ;;  %v51_v24 = vmul.f32 1.442695, %v37_v19  ;;  %v38_v25 = vmin.f32 %v370_v20, 20.0 }
   0xb   :  { %252 = vpow2.f32 %v41_v12 }
   0xc   :  { %254 = vpow2.f32 %v43_v13  ;;  %v53_v37 = vmul.f32 1.442695, %v38_v25 }
   0xd   :  { %256 = vpow2.f32 %v45_v14 }
   0xe   :  { %258 = vpow2.f32 %v47_v16 }
   0xf   :  { %260 = vpow2.f32 %v49_v18 }
  0x10   :  { %v251_v21 = vpop.eup %250  ;;  %262 = vpow2.f32 %v51_v24 }
  0x11   :  { %v253_v22 = vpop.eup %252  ;;  %v55_v23 = vadd.f32 2.0, %v251_v21 }
  0x12   :  { %v255_v26 = vpop.eup %254  ;;  %v56_v27 = vadd.f32 2.0, %v253_v22 }
  0x13   :  { %v257_v28 = vpop.eup %256  ;;  %v373_v29 = vmul.f32 %v251_v21, %v55_v23  ;;  %v57_v30 = vadd.f32 2.0, %v255_v26 }
  0x14   :  { %v259_v31 = vpop.eup %258  ;;  %v375_v32 = vmul.f32 %v253_v22, %v56_v27  ;;  %v58_v33 = vadd.f32 2.0, %v257_v28 }
  0x15   :  { %v261_v34 = vpop.eup %260  ;;  %v378_v35 = vadd.f32 2.0, %v373_v29  ;;  %v380_v36 = vmul.f32 %v255_v26, %v57_v30  ;;  %v59_v40 = vadd.f32 2.0, %v259_v31 }
  0x16   :  { %v383_v38 = vadd.f32 2.0, %v375_v32  ;;  %v385_v39 = vmul.f32 %v257_v28, %v58_v33  ;;  %v60_v41 = vadd.f32 2.0, %v261_v34  ;;  %v403_v50 = vpop.eup %262 }
  0x17   :  { %264 = vrcp.f32 %v378_v35  ;;  %v96_v42 = vand.u32 2147483647, %v378_v35  ;;  %v98_v43 = vand.u32 2147483648, %v378_v35  ;;  %v394_v46 = vadd.f32 2.0, %v380_v36 }
  0x18   :  { %266 = vrcp.f32 %v383_v38  ;;  %v111_v44 = vand.u32 2147483647, %v383_v38  ;;  %v113_v45 = vand.u32 2147483648, %v383_v38  ;;  %v397_v47 = vadd.f32 2.0, %v385_v39 }
  0x19   :  { %v399_v48 = vmul.f32 %v259_v31, %v59_v40  ;;  %v401_v49 = vmul.f32 %v261_v34, %v60_v41  ;;  %268 = vpow2.f32 %v53_v37  ;;  %vm92_vm0 = vweird.f32 %v378_v35 }
  0x1a   :  { %vm107_vm1 = vweird.f32 %v383_v38  ;;  %270 = vrcp.f32 %v394_v46  ;;  %v128_v51 = vand.u32 2147483648, %v394_v46  ;;  %vm409_vm2 = vcmp.eq.f32.partialorder %v96_v42, 8.507059e+37 }
  0x1b   :  { %v99_v53 = vor.u32 1.1754944e-38, %v98_v43  ;;  %v126_v54 = vand.u32 2147483647, %v394_v46  ;;  %272 = vrcp.f32 %v397_v47  ;;  %v143_v55 = vand.u32 2147483648, %v397_v47 }
  0x1c   :  { %vm416_vm3 = vcmp.eq.f32.partialorder %v111_v44, 8.507059e+37  ;;  %v114_v58 = vor.u32 1.1754944e-38, %v113_v45  ;;  %v141_v59 = vand.u32 2147483647, %v397_v47  ;;  %v422_v60 = vadd.f32 2.0, %v399_v48 }
  0x1d   :  { %v265_v56 = vpop.eup %264  ;;  %v425_v61 = vadd.f32 2.0, %v401_v49  ;;  %vm122_vm4 = vweird.f32 %v394_v46  ;;  %v429_v3 = vor.u32 1.1754944e-38, %v128_v51  ;;  %vm137_vm5 = vweird.f32 %v397_v47 }
  0x1e   :  { %v267_v62 = vpop.eup %266  ;;  %v88_v63 = vmul.f32 %v265_v56, %v378_v35  ;;  %vm93_vm6 = vweird.f32 %v265_v56  ;;  %v433_v5 = vor.u32 1.1754944e-38, %v143_v55  ;;  %274 = vrcp.f32 %v422_v60 }
  0x1f   :  { %v103_v4 = vmul.f32 %v267_v62, %v383_v38  ;;  %v436_v8 = vpop.eup %268  ;;  %vm438_vm7 = vcmp.eq.f32.partialorder %v126_v54, 8.507059e+37  ;;  %v156_v12 = vand.u32 2147483647, %v422_v60  ;;  %v158_v13 = vand.u32 2147483648, %v422_v60  ;;  %vm459_vm14 = vmor %vm92_vm0, %vm93_vm6 }
  0x20   :  { %v89_v9 = vsub.f32 1.0, %v88_v63  ;;  %276 = vrcp.f32 %v425_v61  ;;  %v271_v14 = vpop.eup %270  ;;  %vm108_vm9 = vweird.f32 %v267_v62  ;;  %vm446_vm10 = vcmp.eq.f32.partialorder %v141_v59, 8.507059e+37 }
  0x21   :  { %v104_v15 = vsub.f32 1.0, %v103_v4  ;;  %v171_v18 = vand.u32 2147483647, %v425_v61  ;;  %v173_v19 = vand.u32 2147483648, %v425_v61  ;;  %v273_v21 = vpop.eup %272  ;;  %v118_v23 = vmul.f32 %v271_v14, %v394_v46  ;;  %vm467_vm11 = vmor %vm107_vm1, %vm108_vm9 }
  0x22   :  { %v90_v22 = vmul.f32 %v265_v56, %v89_v9  ;;  %vm152_vm12 = vweird.f32 %v422_v60  ;;  %vm123_vm15 = vweird.f32 %v271_v14  ;;  %v133_v26 = vmul.f32 %v273_v21, %v397_v47 }
  0x23   :  { %v105_v25 = vmul.f32 %v267_v62, %v104_v15  ;;  %vm138_vm8 = vweird.f32 %v273_v21  ;;  %v119_v30 = vsub.f32 1.0, %v118_v23  ;;  %vm471_vm13 = vcmp.eq.f32.partialorder %v156_v12, 8.507059e+37  ;;  %vm492_vm9 = vmor %vm122_vm4, %vm123_vm15 }
  0x24   :  { %v91_v27 = vadd.f32 %v265_v56, %v90_v22  ;;  %v159_v33 = vor.u32 1.1754944e-38, %v158_v13  ;;  %v174_v34 = vor.u32 1.1754944e-38, %v173_v19  ;;  %v275_v35 = vpop.eup %274  ;;  %vm73_vm0 = vcmp.gt.f32.partialorder %v353_v2, 20.0 }
  0x25   :  { %v106_v37 = vadd.f32 %v267_v62, %v105_v25  ;;  %v134_v40 = vsub.f32 1.0, %v133_v26  ;;  %vm476_vm6 = vcmp.eq.f32.partialorder %v171_v18, 8.507059e+37  ;;  %v61_v38 = vadd.f32 2.0, %v403_v50 }
  0x26   :  { %v62_v42 = vadd.f32 2.0, %v436_v8  ;;  %v277_v43 = vpop.eup %276  ;;  %v95_v44 = vsel %vm459_vm14, %v265_v56, %v91_v27  ;;  %v120_v45 = vmul.f32 %v271_v14, %v119_v30  ;;  %v148_v51 = vmul.f32 %v275_v35, %v422_v60 }
  0x27   :  { %vm153_vm1 = vweird.f32 %v275_v35  ;;  %v100_v54 = vsel %vm409_vm2, %v99_v53, %v95_v44  ;;  %v110_v55 = vsel %vm467_vm11, %v267_v62, %v106_v37  ;;  %v135_v63 = vmul.f32 %v273_v21, %v134_v40  ;;  %vm503_vm2 = vmor %vm137_vm5, %vm138_vm8 }
  0x28   :  { %v163_v56 = vmul.f32 %v277_v43, %v425_v61  ;;  %v101_v4 = vmul.f32 %v100_v54, %v373_v29  ;;  %v115_v9 = vsel %vm416_vm3, %v114_v58, %v110_v55  ;;  %v121_v52 = vadd.f32 %v271_v14, %v120_v45  ;;  %vm523_vm3 = vmor %vm152_vm12, %vm153_vm1 }
  0x29   :  { %v149_v46 = vsub.f32 1.0, %v148_v51  ;;  %v116_v62 = vmul.f32 %v115_v9, %v375_v32  ;;  %v136_v12 = vadd.f32 %v273_v21, %v135_v63  ;;  %vm168_vm4 = vweird.f32 %v277_v43 }
  0x2a   :  { %v164_v13 = vsub.f32 1.0, %v163_v56  ;;  %v207_v15 = vmul.f32 %v101_v4, %v349_v0  ;;  %v125_v29 = vsel %vm492_vm9, %v271_v14, %v121_v52  ;;  %v512_v58 = vmul.f32 %v403_v50, %v61_v38 }
  0x2b   :  { %v150_v57 = vmul.f32 %v275_v35, %v149_v46  ;;  %v208_v47 = vmul.f32 %v116_v62, %v351_v1  ;;  %v130_v18 = vsel %vm438_vm7, %v429_v3, %v125_v29  ;;  %v140_v32 = vsel %vm503_vm2, %v273_v21, %v136_v12 }
  0x2c   :  { %v165_v14 = vmul.f32 %v277_v43, %v164_v13  ;;  %vm603_vm5 = vcmp.gt.f32.partialorder %v349_v0, 20.0  ;;  %v131_v22 = vmul.f32 %v130_v18, %v380_v36  ;;  %v145_v3 = vsel %vm446_vm10, %v433_v5, %v140_v32 }
  0x2d   :  { %v215_v50 = vsel %vm603_vm5, %v349_v0, %v207_v15  ;;  %v151_v11 = vadd.f32 %v275_v35, %v150_v57  ;;  %vm604_vm7 = vweird.f32 %v425_v61  ;;  %vm607_vm11 = vcmp.gt.f32.partialorder %v351_v1, 20.0 }
  0x2e   :  { %vm536_vm8 = vmor %vm604_vm7, %vm168_vm4  ;;  %223 = vst [vmem:[#allocation5] sm:$0xff] %v215_v50  ;;  %v216_v21 = vsel %vm607_vm11, %v351_v1, %v208_v47  ;;  %v146_v0 = vmul.f32 %v145_v3, %v385_v39  ;;  %v166_v23 = vadd.f32 %v277_v43, %v165_v14  ;;  %v85_v36 = vadd.f32 2.0, %v512_v58 }
  0x2f   :  { %224 = vst [vmem:[#allocation5 + $0x8] sm:$0xff] %v216_v21  ;;  %v209_v5 = vmul.f32 %v131_v22, %v353_v2  ;;  %vm74_vm10 = vcmp.gt.f32.partialorder %v358_v6, 20.0  ;;  %v155_v61 = vsel %vm523_vm3, %v275_v35, %v151_v11  ;;  %v70_v16 = vmul.f32 %v436_v8, %v62_v42 }
  0x30   :  { %v210_v24 = vmul.f32 %v146_v0, %v358_v6  ;;  %v160_v1 = vsel %vm471_vm13, %v159_v33, %v155_v61  ;;  %v170_v39 = vsel %vm536_vm8, %v277_v43, %v166_v23  ;;  %278 = vrcp.f32 %v85_v36 }
  0x31   :  { %v217_v25 = vsel %vm73_vm0, %v353_v2, %v209_v5  ;;  %v161_v26 = vmul.f32 %v160_v1, %v399_v48  ;;  %v175_v27 = vsel %vm476_vm6, %v174_v34, %v170_v39  ;;  %vm75_vm12 = vcmp.gt.f32.partialorder %v360_v7, 20.0 }
  0x32   :  { %225 = vst [vmem:[#allocation5 + $0x10] sm:$0xff] %v217_v25  ;;  %v218_v8 = vsel %vm74_vm10, %v358_v6, %v210_v24  ;;  %v176_v28 = vmul.f32 %v175_v27, %v401_v49  ;;  %vm76_vm13 = vcmp.gt.f32.partialorder %v364_v10, 20.0  ;;  %v86_v31 = vadd.f32 2.0, %v70_v16 }
  0x33   :  { %226 = vst [vmem:[#allocation5 + $0x18] sm:$0xff] %v218_v8  ;;  %v211_v30 = vmul.f32 %v161_v26, %v360_v7  ;;  %v188_v35 = vand.u32 2147483648, %v85_v36  ;;  %vm182_vm14 = vweird.f32 %v85_v36  ;;  %v186_v49 = vand.u32 2147483647, %v85_v36 }
  0x34   :  { %v212_v2 = vmul.f32 %v176_v28, %v364_v10  ;;  %280 = vrcp.f32 %v86_v31  ;;  %vm197_vm1 = vweird.f32 %v86_v31  ;;  %v201_v45 = vand.u32 2147483647, %v86_v31 }
  0x35   :  { %v219_v48 = vsel %vm75_vm12, %v360_v7, %v211_v30  ;;  %v189_v38 = vor.u32 1.1754944e-38, %v188_v35  ;;  %vm187_vm6 = vcmp.eq.f32.partialorder %v186_v49, 8.507059e+37  ;;  %v203_v7 = vand.u32 2147483648, %v86_v31 }
  0x36   :  { %v279_v33 = vpop.eup %278  ;;  %227 = vst [vmem:[#allocation5 + $0x20] sm:$0xff] %v219_v48  ;;  %v220_v34 = vsel %vm76_vm13, %v364_v10, %v212_v2  ;;  %vm77_vm4 = vcmp.gt.f32.partialorder %v367_v17, 20.0  ;;  %vm202_vm3 = vcmp.eq.f32.partialorder %v201_v45, 8.507059e+37  ;;  %vm78_vm5 = vcmp.gt.f32.partialorder %v370_v20, 20.0 }
  0x37   :  { %228 = vst [vmem:[#allocation5 + $0x28] sm:$0xff] %v220_v34  ;;  %v178_v6 = vmul.f32 %v279_v33, %v85_v36  ;;  %vm183_vm15 = vweird.f32 %v279_v33  ;;  %v204_v59 = vor.u32 1.1754944e-38, %v203_v7 }
  0x38   :  { %vm184_vm0 = vmor %vm182_vm14, %vm183_vm15 }
  0x39   :  { %v179_v37 = vsub.f32 1.0, %v178_v6 }
  0x3a   :  { %v281_v40 = vpop.eup %280 }
  0x3b   :  { %v180_v41 = vmul.f32 %v279_v33, %v179_v37  ;;  %v193_v42 = vmul.f32 %v281_v40, %v86_v31  ;;  %vm198_vm9 = vweird.f32 %v281_v40 }
  0x3c   :  { %vm199_vm2 = vmor %vm197_vm1, %vm198_vm9 }
  0x3d   :  { %v181_v43 = vadd.f32 %v279_v33, %v180_v41  ;;  %v194_v44 = vsub.f32 1.0, %v193_v42 }
  0x3f   :  { %v185_v10 = vsel %vm184_vm0, %v279_v33, %v181_v43  ;;  %v195_v54 = vmul.f32 %v281_v40, %v194_v44 }
  0x40   :  { %v190_v51 = vsel %vm187_vm6, %v189_v38, %v185_v10 }
  0x41   :  { %v191_v55 = vmul.f32 %v190_v51, %v512_v58  ;;  %v196_v63 = vadd.f32 %v281_v40, %v195_v54 }
  0x43   :  { %v213_v56 = vmul.f32 %v191_v55, %v367_v17  ;;  %v200_v4 = vsel %vm199_vm2, %v281_v40, %v196_v63 }
  0x44   :  { %v205_v52 = vsel %vm202_vm3, %v204_v59, %v200_v4 }
  0x45   :  { %v221_v9 = vsel %vm77_vm4, %v367_v17, %v213_v56  ;;  %v206_v53 = vmul.f32 %v205_v52, %v70_v16 }
  0x46   :  { %229 = vst [vmem:[#allocation5 + $0x30] sm:$0xff] %v221_v9 }
  0x47   :  { %v214_v46 = vmul.f32 %v206_v53, %v370_v20 }
  0x49   :  { %v222_v62 = vsel %vm78_vm5, %v370_v20, %v214_v46 }
  0x4a   :  { %230 = vst [vmem:[#allocation5 + $0x38] sm:$0xff] %v222_v62 }
  0x4b   :  { %241 = dma.vmem_to_hbm [thread:$0]  %s237_s11, 1024, %s239_s14, [#allocation4]  }
  0x4c   :  { %332 = dma.done.wait [#allocation4], 1024  }
  0x4d   :  { %333 = vsyncadd [#allocation4], 4294966272 }
  0x4e   :  { %246 = vsyncpa [#allocation3], 1 }
  0x4f   :  { %247 = vsyncpa [#allocation4], 1 }

</bundles_post_ra>
